<compile_context>
chip_gen: v7x
topology: tpu7x:2x2x1
jax: 0.10.0
libtpu: 0.0.40
codegen_flags: <defaults>
</compile_context>

<pallas_src>
import jax
import jax.numpy as jnp
from jax.experimental import pallas as pl
from jax.experimental.pallas import tpu as pltpu

LN_EPS = 1e-5          # nn.LayerNorm default
_MAX_L_TILE = 2048     # lane-dense tile ceiling (multiple of 128)


def residual_block_kernel(x_ref, wt_ref, b_ref, o_ref):
    # x_ref / o_ref blocks: (H, L_TILE)   (batch dim squeezed)
    # wt_ref: (H_out, H_in) = W^T with gamma folded in;  b_ref: (H_out, 1)
    x = x_ref[...].astype(jnp.float32)                       # (H, Lt)
    inv_h = jnp.float32(1.0 / x.shape[0])

    # One-pass LayerNorm statistics over d_model (sublane axis), biased var.
    s1 = jnp.sum(x, axis=0, keepdims=True)                   # (1, Lt)
    s2 = jnp.sum(x * x, axis=0, keepdims=True)               # (1, Lt)
    mean = s1 * inv_h
    var = s2 * inv_h - mean * mean
    z = (x - mean) * jax.lax.rsqrt(var + LN_EPS)              # (H, Lt)

    # Position-wise linear (gamma/beta already folded into wt/b):
    #   y[h_out, l] = sum_h W'[h, h_out] * z[h, l]  ==  (W'^T @ z)[h_out, l]
    zc = z.astype(wt_ref.dtype)
    y = jnp.dot(wt_ref[...], zc, preferred_element_type=jnp.float32)
    # dropout = Identity (p = 0.0); pre-LN residual add on the raw input.
    o_ref[...] = (y + b_ref[...] + x).astype(o_ref.dtype)


def _largest_tile_dividing(L_pad, cap):
    """Largest multiple of 128 <= cap that divides L_pad (L_pad % 128 == 0)."""
    lt = max((min(cap, L_pad) // 128) * 128, 128)
    while L_pad % lt:
        lt -= 128
    return lt


def _pick_l_tile(L_pad, B, H, x_itemsize, w_itemsize, vmem_budget=20 << 20):
    # Pipeline VMEM estimate:
    #   x tile + out tile, double-buffered : 4 * H * Lt * x_itemsize
    #   W' (double-buffered despite constant index_map): 2 * H^2 * w_itemsize
    #   bias / slack: negligible
    fixed = 2 * H * H * w_itemsize + 8 * H * x_itemsize
    per_lane = 4 * H * x_itemsize
    cap = max((vmem_budget - fixed) // per_lane, 128)
    lt = _largest_tile_dividing(L_pad, min(cap, _MAX_L_TILE))
    # v7x: make sure both TensorCores get work when B == 1.
    if B == 1 and L_pad // lt < 2 and L_pad >= 256:
        lt = _largest_tile_dividing(L_pad, L_pad // 2)
    return lt


def residual_block(x_bhl, gamma, beta, w, b):
    """x_bhl: [B, d_model, L] (PyTorch transposed=True layout). Returns (out, None)."""
    B, H, L = x_bhl.shape

    # Pad L to a multiple of 128 -> lane-dense stores, bounded VMEM for any L.
    L_pad = ((L + 127) // 128) * 128
    x_in = x_bhl if L_pad == L else jnp.pad(x_bhl, ((0, 0), (0, 0), (0, L_pad - L)))

    # Fold LayerNorm affine into the linear layer (done once, outside kernel):
    #   y = (z_norm*gamma + beta) @ W + b = z_norm @ (diag(gamma) W) + (beta @ W + b)
    # Channels-first form uses W'^T = W^T * gamma (scale columns of W^T).
    wt = jnp.transpose(w) * gamma[None, :].astype(w.dtype)          # (H_out, H_in)
    b_col = (jnp.dot(beta.astype(jnp.float32), w.astype(jnp.float32))
             + b.astype(jnp.float32)).reshape(H, 1)                 # (H_out, 1)

    x_isz = jnp.dtype(x_bhl.dtype).itemsize
    w_isz = jnp.dtype(wt.dtype).itemsize
    l_tile = _pick_l_tile(L_pad, B, H, x_isz, w_isz)
    n_l = L_pad // l_tile

    vmem_usage = 4 * H * l_tile * x_isz + 2 * H * H * w_isz + 8 * H * 4
    vmem_limit = int(min(max(2 * vmem_usage, 32 << 20), 48 << 20))

    out = pl.pallas_call(
        residual_block_kernel,
        out_shape=jax.ShapeDtypeStruct((B, H, L_pad), x_bhl.dtype),
        grid_spec=pltpu.PrefetchScalarGridSpec(
            num_scalar_prefetch=0,
            grid=(B, n_l),
            in_specs=[
                pl.BlockSpec((pl.Squeezed(), H, l_tile),
                             lambda bi, li: (bi, 0, li)),            # x
                pl.BlockSpec((H, H), lambda bi, li: (0, 0)),          # W'^T (resident)
                pl.BlockSpec((H, 1), lambda bi, li: (0, 0)),          # folded bias
            ],
            out_specs=pl.BlockSpec((pl.Squeezed(), H, l_tile),
                                   lambda bi, li: (bi, 0, li)),
        ),
        compiler_params=pltpu.CompilerParams(
            dimension_semantics=("parallel", "parallel"),
            vmem_limit_bytes=vmem_limit),
    )(x_in, wt, b_col)

    if L_pad != L:
        out = out[..., :L]
    return out, None


def _reference(x_bhl, gamma, beta, w, b):
    # Pure-JAX reference of the PyTorch semantics (computed in [B, L, H]).
    x = jnp.transpose(x_bhl, (0, 2, 1)).astype(jnp.float32)
    mean = jnp.mean(x, axis=-1, keepdims=True)
    var = jnp.mean((x - mean) ** 2, axis=-1, keepdims=True)
    z = (x - mean) / jnp.sqrt(var + LN_EPS) * gamma + beta
    y = z @ w.astype(jnp.float32) + b
    out = y + x
    return jnp.transpose(out, (0, 2, 1)).astype(x_bhl.dtype)


if __name__ == "__main__":
    B, d_model, L = 2, 128, 200   # L not a multiple of 128 -> exercises padding path

    key = jax.random.PRNGKey(0)
    kx, kg, kbeta, kw, kb = jax.random.split(key, 5)

    x = jax.random.normal(kx, (B, d_model, L), dtype=jnp.float32)   # [B, d_model, L]
    # Non-trivial LayerNorm affine so the gamma/beta fold is actually tested.
    gamma = 1.0 + 0.1 * jax.random.normal(kg, (d_model,), dtype=jnp.float32)
    beta = 0.1 * jax.random.normal(kbeta, (d_model,), dtype=jnp.float32)
    w = (jax.random.normal(kw, (d_model, d_model), dtype=jnp.float32)
         / jnp.sqrt(jnp.float32(d_model)))
    b = jax.random.normal(kb, (d_model,), dtype=jnp.float32) * 0.01

    out, state = residual_block(x, gamma, beta, w, b)
    out = jax.block_until_ready(out)

    ref = _reference(x, gamma, beta, w, b)
    assert out.shape == x.shape
    assert state is None
    assert jnp.allclose(out, ref, atol=2e-4, rtol=2e-4)

    print("KERNEL_OK")
</pallas_src>

<mosaic_0001>
module attributes {stable_mosaic.version = 11 : i64} {
  func.func @residual_block_kernel(%arg0: i32, %arg1: i32, %arg2: memref<1x128x256xf32, #tpu.memory_space<vmem>>, %arg3: memref<128x128xf32, #tpu.memory_space<vmem>>, %arg4: memref<128x1xf32, #tpu.memory_space<vmem>>, %arg5: memref<1x128x256xf32, #tpu.memory_space<vmem>>) attributes {dimension_semantics = [#tpu.dimension_semantics<parallel>, #tpu.dimension_semantics<parallel>], iteration_bounds = array<i64: 2, 1>, scalar_prefetch = 0 : i64, scratch_operands = 0 : i64, tpu.core_type = #tpu.core_type<tc>, window_params = [{transform_indices = @transform_0, window_bounds = array<i64: 1, 128, 256>}, {pipeline_mode = #tpu.pipeline_mode<synchronous>, transform_indices = @transform_1, window_bounds = array<i64: 128, 128>}, {pipeline_mode = #tpu.pipeline_mode<synchronous>, transform_indices = @transform_2, window_bounds = array<i64: 128, 1>}, {transform_indices = @transform_3, window_bounds = array<i64: 1, 128, 256>}]} {
    %c0 = arith.constant 0 : index
    %c0_0 = arith.constant 0 : index
    %c0_1 = arith.constant 0 : index
    %0 = vector.load %arg2[%c0, %c0_0, %c0_1] : memref<1x128x256xf32, #tpu.memory_space<vmem>>, vector<1x128x256xf32>
    %1 = vector.shape_cast %0 : vector<1x128x256xf32> to vector<128x256xf32>
    %cst = arith.constant dense<0.000000e+00> : vector<256xf32>
    %2 = vector.multi_reduction <add>, %1, %cst [0] : vector<128x256xf32> to vector<256xf32>
    %3 = vector.shape_cast %2 : vector<256xf32> to vector<1x256xf32>
    %4 = arith.mulf %1, %1 : vector<128x256xf32>
    %cst_2 = arith.constant dense<0.000000e+00> : vector<256xf32>
    %5 = vector.multi_reduction <add>, %4, %cst_2 [0] : vector<128x256xf32> to vector<256xf32>
    %6 = vector.shape_cast %5 : vector<256xf32> to vector<1x256xf32>
    %cst_3 = arith.constant 7.812500e-03 : f32
    %7 = vector.broadcast %cst_3 : f32 to vector<1x256xf32>
    %8 = arith.mulf %3, %7 : vector<1x256xf32>
    %cst_4 = arith.constant 7.812500e-03 : f32
    %9 = vector.broadcast %cst_4 : f32 to vector<1x256xf32>
    %10 = arith.mulf %6, %9 : vector<1x256xf32>
    %11 = arith.mulf %8, %8 : vector<1x256xf32>
    %12 = arith.subf %10, %11 : vector<1x256xf32>
    %13 = vector.broadcast %8 : vector<1x256xf32> to vector<128x256xf32>
    %14 = arith.subf %1, %13 : vector<128x256xf32>
    %cst_5 = arith.constant 9.99999974E-6 : f32
    %15 = vector.broadcast %cst_5 : f32 to vector<1x256xf32>
    %16 = arith.addf %12, %15 : vector<1x256xf32>
    %17 = math.rsqrt %16 : vector<1x256xf32>
    %18 = vector.broadcast %17 : vector<1x256xf32> to vector<128x256xf32>
    %19 = arith.mulf %14, %18 : vector<128x256xf32>
    %c0_6 = arith.constant 0 : index
    %c0_7 = arith.constant 0 : index
    %20 = vector.load %arg3[%c0_6, %c0_7] : memref<128x128xf32, #tpu.memory_space<vmem>>, vector<128x128xf32>
    %cst_8 = arith.constant dense<0.000000e+00> : vector<128x256xf32>
    %21 = tpu.matmul %20, %19, %cst_8 {dimension_numbers = #tpu.dot_dimension_numbers<[1], [0], [0], [1], [0, 0, 1, 1], [], []>} : vector<128x128xf32>, vector<128x256xf32>, vector<128x256xf32> -> vector<128x256xf32>
    %c0_9 = arith.constant 0 : index
    %c0_10 = arith.constant 0 : index
    %22 = vector.load %arg4[%c0_9, %c0_10] : memref<128x1xf32, #tpu.memory_space<vmem>>, vector<128x1xf32>
    %23 = vector.broadcast %22 : vector<128x1xf32> to vector<128x256xf32>
    %24 = arith.addf %21, %23 : vector<128x256xf32>
    %25 = arith.addf %24, %1 : vector<128x256xf32>
    %c0_11 = arith.constant 0 : index
    %c0_12 = arith.constant 0 : index
    %c0_13 = arith.constant 0 : index
    %26 = vector.load %arg5[%c0_11, %c0_12, %c0_13] : memref<1x128x256xf32, #tpu.memory_space<vmem>>, vector<1x128x256xf32>
    %27 = vector.shape_cast %26 : vector<1x128x256xf32> to vector<128x256xf32>
    %28 = vector.shape_cast %25 : vector<128x256xf32> to vector<1x128x256xf32>
    tpu.vector_store %arg5[%c0_11, %c0_12, %c0_13], %28 {strides = array<i32>} : memref<1x128x256xf32, #tpu.memory_space<vmem>>, vector<1x128x256xf32>,
    return
  }
  func.func @transform_0(%arg0: i32, %arg1: i32) -> (i32, i32, i32) {
    %c0_i32 = arith.constant 0 : i32
    %c0_i32_0 = arith.constant 0 : i32
    return %arg0, %c0_i32, %arg1 : i32, i32, i32
  }
  func.func @transform_1(%arg0: i32, %arg1: i32) -> (i32, i32) {
    %c0_i32 = arith.constant 0 : i32
    %c0_i32_0 = arith.constant 0 : i32
    %c0_i32_1 = arith.constant 0 : i32
    return %c0_i32, %c0_i32_0 : i32, i32
  }
  func.func @transform_2(%arg0: i32, %arg1: i32) -> (i32, i32) {
    %c0_i32 = arith.constant 0 : i32
    %c0_i32_0 = arith.constant 0 : i32
    %c0_i32_1 = arith.constant 0 : i32
    return %c0_i32, %c0_i32_0 : i32, i32
  }
  func.func @transform_3(%arg0: i32, %arg1: i32) -> (i32, i32, i32) {
    %c0_i32 = arith.constant 0 : i32
    %c0_i32_0 = arith.constant 0 : i32
    return %arg0, %c0_i32, %arg1 : i32, i32, i32
  }
}

</mosaic_0001>

<bundles_post_ra>
// kernel: tpu_custom_call.1
= control target key start
LH: loop header
LB: loop body
LE: loop exit
PB: predicated region body
PF: predicated region fallthrough
CT: control target
= control target key end

     0   :  { %8 = vsyncpa [#allocation3], 0  ;;  %s1834_s0 = inlined_call_operand.hbm [shape: f32[2,128,256], index: 0, kind: input, shape index: {}]   ;;  %s1835_s1 = inlined_call_operand.vmem [shape: f32[128,128], index: 1, kind: input, shape index: {}]   ;;  %s1836_s2 = inlined_call_operand.vmem [shape: f32[128,1], index: 2, kind: input, shape index: {}]   ;;  %s1837_s3 = inlined_call_operand.hbm [shape: f32[2,128,256], index: 3, kind: output, shape index: {}]  }
   0x1   :  { %10 = vsyncpa [#allocation3 + $0x1], 0 }
   0x2   :  { %11 = vsyncpa [#allocation4], 0 }
   0x3   :  { %13 = vsyncpa [#allocation4 + $0x1], 0  ;;  %s1154_s12 = smov 0   ;;  %s1156_s13 = smov 0  }
   0x4   :  { %s1158_s14 = smov 0   ;;  %s1160_s15 = smov 0  }
   0x5   :  { %s1162_s16 = smov 0   ;;  %s1164_s17 = smov 0  }
   0x6 LB: > { %s873_s18 = sadd.s32 4294967295, %s1124_s17   ;;  %s874_s19 = sadd.s32 4294967294, %s1124_s17   ;;  %s1124_s17 = sphi %s1164_s17, %s19_s17   ;;  %s1120_s16 = sphi %s1162_s16, %s1852_s16   ;;  %s1116_s15 = sphi %s1160_s15, %s1851_s15   ;;  %s1112_s14 = sphi %s1158_s14, %s1850_s14   ;;  %s1108_s13 = sphi %s1156_s13, %s1849_s13   ;;  %s1104_s12 = sphi %s1154_s12, %s1848_s12  }
   0x7   : > { %s31_s20 = sadd.s32 1, %s1120_s16  ;;  %s40_s21 = sadd.s32 1, %s1112_s14 }
   0x8   : > { %p33_p0 = scmp.ge.s32.totalorder %s31_s20, 2  ;;  %p47_p1 = scmp.ne.s32.totalorder %s1112_s14, %s1108_s13 }
   0x9   : > { %p48_p2 = scmp.eq.s32.totalorder %s1124_s17, 0  ;;  %p53_p3 = scmp.ne.s32.totalorder %s1108_s13, %s1104_s12 }
   0xa   : > { %s1854_s20 = smov (%p33_p0, %s31_s20), 0  ;;  %p54_p5 = scmp.eq.s32.totalorder %s873_s18, 0 }
   0xb   : > { %p1195_p4 = por %p48_p2, %p47_p1  ;;  %s35_s23 = ssub.s32 %s1120_s16, %s1854_s20 }
   0xc   : > { %p121_p6 = scmp.eq.s32.totalorder %s873_s18, 1  ;;  %p38_p7 = scmp.eq.s32.totalorder %s35_s23, 0 }
   0xd   : > { %p1201_p8 = por %p54_p5, %p53_p3  ;;  %p127_p10 = scmp.eq.s32.totalorder %s874_s19, 1 }
   0xe   : > { %p1205_p9 = por %p121_p6, %p47_p1  ;;  %p950_p13 = scmp.lt.s32.totalorder %s1124_s17, 2 }
   0xf   : > { %s1210_s26 = scalar_select %p38_p7, %s1112_s14, %s40_s21  }
  0x10   : > { %s1841_s25 = scalar_select %p1205_p9, 1, 0 }
  0x11   : > { %p1212_p11 = por %p127_p10, %p53_p3  ;;  %s153_s28 = sand.u32 1, %s1112_s14  }
  0x12   : > { %s877_s29 = sshll.u32 %s153_s28, 8  ;;  %s888_s30 = sshll.u32 %s1120_s16, 12 }
  0x13   : > { %s1842_s27 = scalar_select %p1212_p11, 1, 0 }
  0x14   : > { %s1223_s6 = scalar_lea.hbm %s1834_s0, %s888_s30  ;;  %s157_s7 = scalar_lea.vmem [#allocation2], %s877_s29 }
  0x15   : > { %s166_s8 = sshll.u32 %s157_s7, 4  ;;  %p1229_p0 = pnand %p950_p13, %p1195_p4  ;;  %s1225_s8 = int_to_ptr.vmem [resolvable:$true] %s166_s8 }
  0x16   : > { %s1234_s10 = scalar_lea.sflag [#allocation3], %s153_s28  ;;  %s1012_s11 = scalar_lea.hbm %s1223_s6, 4096 }
  0x17   : > { %p1013_p2 = scmp.ne.s32.totalorder %s1223_s6, %s1012_s11  ;;  %p1014_p3 = pneg %p1229_p0 }
  0x18   : > { %s1017_s21 = scalar_lea.hbm %s1834_s0, 8192  ;;  %p1018_p4 = scmp.lt.u32.totalorder %s1223_s6, %s1834_s0 }
  0x19   : > { %p1015_p5 = pnand %p1014_p3, %p1013_p2  ;;  %p1019_p7 = scmp.lt.u32.totalorder %s1017_s21, %s1012_s11 }
  0x1a   : > { %p1021_p13 = scmp.lt.u32.totalorder %s1012_s11, %s1223_s6 }
  0x1b   : > { %p1016_p6 = pneg %p1015_p5  ;;  %p1020_p10 = por %p1019_p7, %p1018_p4 }
  0x1d   : > { %p1022_p12 = por %p1021_p13, %p1020_p10 }
  0x1f   : > { %p1023_p1 = pnand %p1022_p12, %p1016_p6 }
  0x21   : > { %1026 = shalt.err (!%p1023_p1)
}
  0x22   : > { %s1027_s28 = scalar_lea.vmem %s1225_s8, 4096  ;;  %s1126_s29 = smov [#allocation2]  }
  0x23   : > { %p1028_p2 = scmp.ne.s32.totalorder %s1225_s8, %s1027_s28  ;;  %s1032_s30 = sshll.u32 %s1126_s29, 4  ;;  %s1033_s30 = int_to_ptr.vmem [resolvable:$false] %s1032_s30 }
  0x24   : > { %s1034_s4 = scalar_lea.vmem %s1033_s30, 8192  ;;  %p1035_p9 = scmp.lt.s32.totalorder %s1225_s8, %s1033_s30 }
  0x25   : > { %p1030_p5 = pnand %p1028_p2, %p1014_p3  ;;  %p1036_p4 = scmp.lt.s32.totalorder %s1034_s4, %s1027_s28 }
  0x27   : > { %p1031_p11 = pneg %p1030_p5  ;;  %p1037_p7 = por %p1036_p4, %p1035_p9 }
  0x29   : > { %p1038_p10 = pnand %p1037_p7, %p1031_p11 }
  0x2b   : > { %1041 = shalt.err (!%p1038_p10)
}
  0x2c   : > { %s1127_s5 = smov 256   ;;  %s1128_s7 = smov 16  }
  0x2d   : > { %945 = dma.hbm_to_vmem [thread:$0]  (!%p1229_p0), %s1223_s6, 4096, %s1225_s8, %s1234_s10, %s1127_s5, %s1127_s5, %s1128_s7  }
  0x2e   : > { %p174_p12 = scmp.lt.s32.totalorder %s1124_s17, 3  ;;  %p1844_p1 = scmp.ge.s32.totalorder %s1124_s17, 1 }
  0x30   : > { %p175_p3 = pnand %p1844_p1, %p174_p12 }
  0x31   : > { %s1266_s11 = sand.u32 (!%p175_p3), 1, %s1108_s13  }
  0x32   : > { %178 = sbr.rel (%p175_p3) target bundleno = 420 (0x1a4), region = 32  ;;  %s881_s18 = sshll.u32 (!%p175_p3), %s1266_s11, 8 }
  0x33   : > { %s181_s19 = scalar_lea.sflag (!%p175_p3), [#allocation3], %s1266_s11  ;;  %s1272_s21 = scalar_lea.vmem (!%p175_p3), [#allocation2], %s881_s18 }
  0x39   : > { %1095 = dma.done.wait (%p1201_p8), %s181_s19, 4096  }
  0x3a   : > { %1097 = vsyncadd (%p1201_p8), %s181_s19, 4294963200  ;;  %v1129_v0 = vmov 0.0   ;;  %v1281_v1 = vld [vmem:[%s1272_s21 + $0x8] sm:$0xff]  ;;  %v1284_v2 = vld [vmem:[%s1272_s21 + $0x18] sm:$0xff]  ;;  %v1130_v50 = vmov 0   ;;  %s1706_s22 = scalar_lea.vmem [#allocation5], %s881_s18 }
  0x3b   : > { %609 = vmatprep.mubr.f32.mxu0 %v1129_v0  ;;  %657 = vmatprep.mubr.f32.mxu1 %v1129_v0  ;;  %v1287_v3 = vld [vmem:[%s1272_s21 + $0x28] sm:$0xff]  ;;  %v1290_v4 = vld [vmem:[%s1272_s21 + $0x38] sm:$0xff]  ;;  %v262_v5 = vadd.f32 %v1284_v2, %v1281_v1  ;;  %v284_v6 = vmul.f32 %v1281_v1, %v1281_v1  ;;  %v286_v7 = vmul.f32 %v1284_v2, %v1284_v2  ;;  %v1311_v15 = vld [vmem:[%s1272_s21] sm:$0xff]  ;;  %s889_s18 = sshll.u32 %s1116_s15, 12  ;;  %s786_s23 = sshll.u32 %s1706_s22, 4  ;;  %s1779_s23 = int_to_ptr.vmem [resolvable:$true] %s786_s23 }
  0x3c   : > { %v288_v8 = vmul.f32 %v1287_v3, %v1287_v3  ;;  %v1301_v9 = vld [vmem:[%s1272_s21 + $0x48] sm:$0xff]  ;;  %v290_v11 = vmul.f32 %v1290_v4, %v1290_v4  ;;  %v1307_v13 = vld [vmem:[%s1272_s21 + $0x58] sm:$0xff]  ;;  %v1314_v16 = vld [vmem:[%s1272_s21 + $0x10] sm:$0xff]  ;;  %v283_v30 = vmul.f32 %v1311_v15, %v1311_v15  ;;  %1007 = vset.pattern.permute.xlu1 %v1130_v50  ;;  %1006 = vset.pattern.permute.xlu0 %v1130_v50  ;;  %s1777_s28 = scalar_lea.hbm %s1837_s3, %s889_s18  ;;  %s771_s29 = scalar_lea.sflag [#allocation4], %s1266_s11 }
  0x3d   : > { %v263_v10 = vadd.f32 %v262_v5, %v1287_v3  ;;  %v336_v12 = vadd.f32 %v286_v7, %v284_v6  ;;  %v292_v17 = vmul.f32 %v1301_v9, %v1301_v9  ;;  %v1319_v19 = vld [vmem:[%s1272_s21 + $0x20] sm:$0xff]  ;;  %v241_v20 = vadd.f32 %v1314_v16, %v1311_v15  ;;  %v1324_v21 = vld [vmem:[%s1272_s21 + $0x68] sm:$0xff]  ;;  %v1328_v23 = vld [vmem:[%s1272_s21 + $0x30] sm:$0xff]  ;;  %s1042_s30 = scalar_lea.vmem %s1779_s23, 4096  ;;  %p1845_p9 = scmp.ne.s32.totalorder %s1841_s25, 0 }
  0x3e   : > { %v294_v24 = vmul.f32 %v1307_v13, %v1307_v13  ;;  %v1334_v27 = vld [vmem:[%s1272_s21 + $0x78] sm:$0xff]  ;;  %v1338_v29 = vld [vmem:[%s1272_s21 + $0x40] sm:$0xff]  ;;  %v285_v31 = vmul.f32 %v1314_v16, %v1314_v16  ;;  %v296_v32 = vmul.f32 %v1324_v21, %v1324_v21  ;;  %v1348_v35 = vld [vmem:[%s1272_s21 + $0x88] sm:$0xff]  ;;  %v287_v38 = vmul.f32 %v1319_v19, %v1319_v19  ;;  %p1043_p8 = scmp.ne.s32.totalorder %s1779_s23, %s1042_s30  ;;  %s1131_s4 = smov [#allocation5]  }
  0x3f   : > { %v264_v14 = vadd.f32 %v263_v10, %v1290_v4  ;;  %v337_v18 = vadd.f32 %v336_v12, %v288_v8  ;;  %v242_v26 = vadd.f32 %v241_v20, %v1319_v19  ;;  %v1352_v37 = vld [vmem:[%s1272_s21 + $0x50] sm:$0xff]  ;;  %v298_v39 = vmul.f32 %v1334_v27, %v1334_v27  ;;  %v1360_v42 = vld [vmem:[%s1272_s21 + $0x98] sm:$0xff]  ;;  %v1364_v44 = vld [vmem:[%s1272_s21 + $0x60] sm:$0xff]  ;;  %s1046_s5 = sshll.u32 %s1131_s4, 4  ;;  %s1047_s5 = int_to_ptr.vmem [resolvable:$false] %s1046_s5 }
  0x40   : > { %v289_v45 = vmul.f32 %v1328_v23, %v1328_v23  ;;  %v315_v46 = vadd.f32 %v285_v31, %v283_v30  ;;  %v300_v47 = vmul.f32 %v1348_v35, %v1348_v35  ;;  %v1372_v51 = vld [vmem:[%s1272_s21 + $0xa8] sm:$0xff]  ;;  %v1376_v53 = vld [vmem:[%s1272_s21 + $0x70] sm:$0xff]  ;;  %v291_v54 = vmul.f32 %v1338_v29, %v1338_v29  ;;  %v449_v60 = vld [vmem:[%s1836_s2] sm:$0xff]  ;;  %p1044_p11 = pnand %p1043_p8, %p1845_p9  ;;  %s1048_s7 = scalar_lea.vmem %s1047_s5, 8192 }
  0x41   : > { %v265_v22 = vadd.f32 %v264_v14, %v1301_v9  ;;  %v338_v25 = vadd.f32 %v337_v18, %v290_v11  ;;  %v243_v34 = vadd.f32 %v242_v26, %v1328_v23  ;;  %v302_v56 = vmul.f32 %v1360_v42, %v1360_v42  ;;  %v451_v59 = vld [vmem:[%s1836_s2 + $0x10] sm:$0xff]  ;;  %v1390_v61 = vld [vmem:[%s1272_s21 + $0xb8] sm:$0xff]  ;;  %v1394_v63 = vld [vmem:[%s1272_s21 + $0x80] sm:$0xff]  ;;  %467 = vperm.xlu0 %1006, %v449_v60   ;;  %p1049_p6 = scmp.lt.s32.totalorder %s1779_s23, %s1047_s5  ;;  %p1050_p13 = scmp.lt.s32.totalorder %s1048_s7, %s1042_s30 }
  0x42   : > { %v316_v55 = vadd.f32 %v315_v46, %v287_v38  ;;  %v293_v5 = vmul.f32 %v1352_v37, %v1352_v37  ;;  %477 = vperm.xlu1 %1007, %v451_v59   ;;  %v304_v7 = vmul.f32 %v1372_v51, %v1372_v51  ;;  %v452_v11 = vld [vmem:[%s1836_s2 + $0x18] sm:$0xff]  ;;  %v450_v12 = vld [vmem:[%s1836_s2 + $0x8] sm:$0xff]  ;;  %v1412_v18 = vld [vmem:[%s1272_s21 + $0x90] sm:$0xff]  ;;  %v295_v20 = vmul.f32 %v1364_v44, %v1364_v44  ;;  %p1045_p0 = pneg %p1044_p11 }
  0x43   : > { %v266_v28 = vadd.f32 %v265_v22, %v1307_v13  ;;  %v339_v33 = vadd.f32 %v338_v25, %v292_v17  ;;  %v244_v41 = vadd.f32 %v243_v34, %v1338_v29  ;;  %v1408_v14 = vld [vmem:[%s1272_s21 + $0xc8] sm:$0xff]  ;;  %v1424_v31 = vld [vmem:[%s1272_s21 + $0xa0] sm:$0xff]  ;;  %v299_v46 = vmul.f32 %v1394_v63, %v1394_v63  ;;  %p1051_p2 = por %p1050_p13, %p1049_p6 }
  0x44   : > { %v317_v6 = vadd.f32 %v316_v55, %v289_v45  ;;  %v308_v34 = vmul.f32 %v1408_v14, %v1408_v14  ;;  %v1442_v45 = vld [vmem:[%s1272_s21 + $0xb0] sm:$0xff]  ;;  %v1454_v55 = vld [vmem:[%s1272_s21 + $0xc0] sm:$0xff] }
  0x45   : > { %v267_v36 = vadd.f32 %v266_v28, %v1324_v21  ;;  %v340_v40 = vadd.f32 %v339_v33, %v294_v24  ;;  %v245_v49 = vadd.f32 %v244_v41, %v1352_v37  ;;  %v306_v24 = vmul.f32 %v1390_v61, %v1390_v61  ;;  %v1420_v28 = vld [vmem:[%s1272_s21 + $0xd8] sm:$0xff]  ;;  %472 = vperm.xlu0 %1006, %v450_v12   ;;  %v1438_v41 = vld [vmem:[%s1272_s21 + $0xe8] sm:$0xff]  ;;  %p1052_p5 = pnand %p1051_p2, %p1045_p0 }
  0x46   : > { %v318_v22 = vadd.f32 %v317_v6, %v291_v54  ;;  %482 = vperm.xlu1 %1007, %v452_v11  }
  0x47   : > { %v268_v43 = vadd.f32 %v267_v36, %v1334_v27  ;;  %v341_v48 = vadd.f32 %v340_v40, %v296_v32  ;;  %v246_v58 = vadd.f32 %v245_v49, %v1364_v44  ;;  %v297_v32 = vmul.f32 %v1376_v53, %v1376_v53  ;;  %v453_v40 = vld [vmem:[%s1836_s2 + $0x20] sm:$0xff] }
  0x48   : > { %v319_v33 = vadd.f32 %v318_v22, %v293_v5  ;;  %v455_v5 = vld [vmem:[%s1836_s2 + $0x30] sm:$0xff]  ;;  %v1478_v22 = vld [vmem:[%s1272_s21 + $0xe0] sm:$0xff] }
  0x49   : > { %v269_v52 = vadd.f32 %v268_v43, %v1348_v35  ;;  %v342_v57 = vadd.f32 %v341_v48, %v298_v39  ;;  %v247_v10 = vadd.f32 %v246_v58, %v1376_v53  ;;  %v454_v39 = vld [vmem:[%s1836_s2 + $0x28] sm:$0xff]  ;;  %v310_v48 = vmul.f32 %v1420_v28, %v1420_v28  ;;  %487 = vperm.xlu0 %1006, %v453_v40  }
  0x4a   : > { %492 = vperm.xlu1 %1007, %v454_v39   ;;  %v312_v58 = vmul.f32 %v1438_v41, %v1438_v41 }
  0x4b   : > { %v270_v62 = vadd.f32 %v269_v52, %v1360_v42  ;;  %v343_v8 = vadd.f32 %v342_v57, %v300_v47  ;;  %v248_v26 = vadd.f32 %v247_v10, %v1394_v63  ;;  %v320_v47 = vadd.f32 %v319_v33, %v295_v20  ;;  %v1450_v52 = vld [vmem:[%s1272_s21 + $0xf8] sm:$0xff]  ;;  %v457_v33 = vld [vmem:[%s1836_s2 + $0x40] sm:$0xff] }
  0x4c   : > { %v314_v11 = vmul.f32 %v1450_v52, %v1450_v52 }
  0x4d   : > { %v271_v17 = vadd.f32 %v270_v62, %v1372_v51  ;;  %v344_v25 = vadd.f32 %v343_v8, %v302_v56  ;;  %v249_v38 = vadd.f32 %v248_v26, %v1412_v18  ;;  %v301_v56 = vmul.f32 %v1412_v18, %v1412_v18  ;;  %v456_v62 = vld [vmem:[%s1836_s2 + $0x38] sm:$0xff]  ;;  %497 = vperm.xlu0 %1006, %v455_v5  }
  0x4e   : > { %v321_v57 = vadd.f32 %v320_v47, %v297_v32  ;;  %v303_v8 = vmul.f32 %v1424_v31, %v1424_v31  ;;  %502 = vperm.xlu1 %1007, %v456_v62   ;;  %v458_v32 = vld [vmem:[%s1836_s2 + $0x48] sm:$0xff] }
  0x4f   : > { %v272_v30 = vadd.f32 %v271_v17, %v1390_v61  ;;  %v345_v36 = vadd.f32 %v344_v25, %v304_v7  ;;  %v250_v50 = vadd.f32 %v249_v38, %v1424_v31  ;;  %v1469_v7 = vld [vmem:[%s1272_s21 + $0xd0] sm:$0xff]  ;;  %v307_v38 = vmul.f32 %v1454_v55, %v1454_v55 }
  0x50   : > { %v322_v10 = vadd.f32 %v321_v57, %v299_v46  ;;  %v309_v47 = vmul.f32 %v1469_v7, %v1469_v7 }
  0x51   : > { %v273_v43 = vadd.f32 %v272_v30, %v1408_v14  ;;  %v346_v49 = vadd.f32 %v345_v36, %v306_v24  ;;  %v251_v60 = vadd.f32 %v250_v50, %v1442_v45  ;;  %v305_v24 = vmul.f32 %v1442_v45, %v1442_v45  ;;  %v1490_v36 = vld [vmem:[%s1272_s21 + $0xf0] sm:$0xff]  ;;  %507 = vperm.xlu0 %1006, %v457_v33  }
  0x52   : > { %v323_v25 = vadd.f32 %v322_v10, %v301_v56  ;;  %512 = vperm.xlu1 %1007, %v458_v32   ;;  %v459_v56 = vld [vmem:[%s1836_s2 + $0x50] sm:$0xff] }
  0x53   : > { %v274_v54 = vadd.f32 %v273_v43, %v1420_v28  ;;  %v347_v59 = vadd.f32 %v346_v49, %v308_v34  ;;  %v252_v17 = vadd.f32 %v251_v60, %v1454_v55 }
  0x54   : > { %v324_v39 = vadd.f32 %v323_v25, %v303_v8 }
  0x55   : > { %v275_v6 = vadd.f32 %v274_v54, %v1438_v41  ;;  %v348_v12 = vadd.f32 %v347_v59, %v310_v48  ;;  %v253_v30 = vadd.f32 %v252_v17, %v1469_v7  ;;  %v460_v54 = vld [vmem:[%s1836_s2 + $0x58] sm:$0xff]  ;;  %517 = vperm.xlu0 %1006, %v459_v56   ;;  %v461_v17 = vld [vmem:[%s1836_s2 + $0x60] sm:$0xff] }
  0x56   : > { %v325_v48 = vadd.f32 %v324_v39, %v305_v24  ;;  %522 = vperm.xlu1 %1007, %v460_v54  }
  0x57   : > { %v276_v20 = vadd.f32 %v275_v6, %v1450_v52  ;;  %v349_v26 = vadd.f32 %v348_v12, %v312_v58  ;;  %v254_v43 = vadd.f32 %v253_v30, %v1478_v22  ;;  %v311_v58 = vmul.f32 %v1478_v22, %v1478_v22  ;;  %v462_v12 = vld [vmem:[%s1836_s2 + $0x68] sm:$0xff] }
  0x58   : > { %v326_v59 = vadd.f32 %v325_v48, %v307_v38  ;;  %v313_v6 = vmul.f32 %v1490_v36, %v1490_v36  ;;  %v464_v38 = vld [vmem:[%s1836_s2 + $0x78] sm:$0xff] }
  0x59   : > { %v277_v34 = vrot.slane %v276_v20, 4  ;;  %v350_v40 = vadd.f32 %v349_v26, %v314_v11  ;;  %v255_v50 = vadd.f32 %v254_v43, %v1490_v36  ;;  %527 = vperm.xlu0 %1006, %v461_v17   ;;  %v463_v43 = vld [vmem:[%s1836_s2 + $0x70] sm:$0xff] }
  0x5a   : > { %v327_v8 = vadd.f32 %v326_v59, %v309_v47  ;;  %532 = vperm.xlu1 %1007, %v462_v12  }
  0x5b   : > { %v278_v46 = vadd.f32 %v277_v34, %v276_v20  ;;  %v351_v49 = vrot.slane %v350_v40, 4  ;;  %v256_v62 = vrot.slane %v255_v50, 4 }
  0x5c   : > { %v328_v24 = vadd.f32 %v327_v8, %v311_v58 }
  0x5d   : > { %v279_v57 = vrot.slane %v278_v46, 2  ;;  %v352_v60 = vadd.f32 %v351_v49, %v350_v40  ;;  %v257_v11 = vadd.f32 %v256_v62, %v255_v50  ;;  %537 = vperm.xlu0 %1006, %v463_v43  }
  0x5e   : > { %v329_v32 = vadd.f32 %v328_v24, %v313_v6  ;;  %542 = vperm.xlu1 %1007, %v464_v38  }
  0x5f   : > { %v280_v5 = vadd.f32 %v279_v57, %v278_v46  ;;  %v353_v10 = vrot.slane %v352_v60, 2  ;;  %v258_v26 = vrot.slane %v257_v11, 2 }
  0x60   : > { %v330_v40 = vrot.slane %v329_v32, 4 }
  0x61   : > { %v281_v20 = vrot.slane %v280_v5, 1  ;;  %v354_v25 = vadd.f32 %v353_v10, %v352_v60  ;;  %v259_v34 = vadd.f32 %v258_v26, %v257_v11 }
  0x62   : > { %v331_v49 = vadd.f32 %v330_v40, %v329_v32 }
  0x63   : > { %v282_v30 = vadd.f32 %v281_v20, %v280_v5  ;;  %v355_v33 = vrot.slane %v354_v25, 1  ;;  %v260_v47 = vrot.slane %v259_v34, 1 }
  0x64   : > { %v332_v56 = vrot.slane %v331_v49, 2 }
  0x65   : > { %v1517_v39 = vmul.f32 0.0078125, %v282_v30  ;;  %v356_v46 = vadd.f32 %v355_v33, %v354_v25  ;;  %v261_v54 = vadd.f32 %v260_v47, %v259_v34 }
  0x66   : > { %v333_v58 = vadd.f32 %v332_v56, %v331_v49 }
  0x67   : > { %v362_v48 = vmul.f32 %v1517_v39, %v1517_v39  ;;  %v360_v50 = vmul.f32 0.0078125, %v356_v46  ;;  %v1524_v59 = vmul.f32 0.0078125, %v261_v54  ;;  %v366_v11 = vsub.f32 %v1281_v1, %v1517_v39 }
  0x68   : > { %v334_v62 = vrot.slane %v333_v58, 1  ;;  %v368_v12 = vsub.f32 %v1284_v2, %v1517_v39  ;;  %v370_v30 = vsub.f32 %v1287_v3, %v1517_v39  ;;  %v372_v32 = vsub.f32 %v1290_v4, %v1517_v39 }
  0x69   : > { %v364_v57 = vsub.f32 %v360_v50, %v362_v48  ;;  %v361_v6 = vmul.f32 %v1524_v59, %v1524_v59  ;;  %v365_v33 = vsub.f32 %v1311_v15, %v1524_v59  ;;  %v367_v34 = vsub.f32 %v1314_v16, %v1524_v59 }
  0x6a   : > { %v335_v5 = vadd.f32 %v334_v62, %v333_v58  ;;  %v369_v38 = vsub.f32 %v1319_v19, %v1524_v59  ;;  %v371_v40 = vsub.f32 %v1328_v23, %v1524_v59  ;;  %v374_v47 = vsub.f32 %v1301_v9, %v1517_v39 }
  0x6b   : > { %v398_v60 = vadd.f32 1e-05, %v364_v57  ;;  %v376_v48 = vsub.f32 %v1307_v13, %v1517_v39  ;;  %v373_v50 = vsub.f32 %v1338_v29, %v1524_v59  ;;  %v375_v54 = vsub.f32 %v1352_v37, %v1524_v59 }
  0x6c   : > { %v359_v8 = vmul.f32 0.0078125, %v335_v5  ;;  %v378_v56 = vsub.f32 %v1324_v21, %v1517_v39 }
  0x6d   : > { %1008 = vrsqrt.f32 %v398_v60 }
  0x6e   : > { %v363_v10 = vsub.f32 %v359_v8, %v361_v6 }
  0x70   : > { %v397_v17 = vadd.f32 1e-05, %v363_v10  ;;  %v380_v10 = vsub.f32 %v1334_v27, %v1517_v39 }
  0x72   : > { %1010 = vrsqrt.f32 %v397_v17  ;;  %v379_v17 = vsub.f32 %v1376_v53, %v1524_v59 }
  0x77   : > { %v1532_v20 = vpop.eup %1008 }
  0x78   : > { %v402_v24 = vmul.f32 %v1532_v20, %v366_v11  ;;  %v404_v25 = vmul.f32 %v1532_v20, %v368_v12  ;;  %v406_v43 = vmul.f32 %v1532_v20, %v370_v30  ;;  %v408_v46 = vmul.f32 %v1532_v20, %v372_v32 }
  0x79   : > { %v410_v6 = vmul.f32 %v1532_v20, %v374_v47  ;;  %v412_v8 = vmul.f32 %v1532_v20, %v376_v48  ;;  %v377_v12 = vsub.f32 %v1364_v44, %v1524_v59  ;;  %v388_v47 = vsub.f32 %v1390_v61, %v1517_v39 }
  0x7a   : > { %v890_v26 = vpack.c.bf16 %v404_v25, %v402_v24  ;;  %v894_v5 = vpack.c.bf16 %v408_v46, %v406_v43  ;;  %v382_v24 = vsub.f32 %v1348_v35, %v1517_v39  ;;  %v384_v25 = vsub.f32 %v1360_v42, %v1517_v39 }
  0x7b   : > { %v383_v43 = vsub.f32 %v1412_v18, %v1524_v59  ;;  %v386_v46 = vsub.f32 %v1372_v51, %v1517_v39 }
  0x7c   : > { %891 = vmatprep.subr.bf16.mxu0 %v890_v26  ;;  %922 = vmatprep.subr.bf16.mxu1 %v890_v26  ;;  %v1554_v49 = vpop.eup %1010 }
  0x7d   : > { %v401_v57 = vmul.f32 %v1554_v49, %v365_v33  ;;  %v403_v58 = vmul.f32 %v1554_v49, %v367_v34  ;;  %v405_v60 = vmul.f32 %v1554_v49, %v369_v38  ;;  %v407_v62 = vmul.f32 %v1554_v49, %v371_v40 }
  0x7e   : > { %v409_v30 = vmul.f32 %v1554_v49, %v373_v50  ;;  %v411_v32 = vmul.f32 %v1554_v49, %v375_v54  ;;  %v898_v33 = vpack.c.bf16 %v412_v8, %v410_v6  ;;  %v414_v34 = vmul.f32 %v1532_v20, %v378_v56 }
  0x7f   : > { %v892_v11 = vpack.c.bf16 %v403_v58, %v401_v57  ;;  %v896_v26 = vpack.c.bf16 %v407_v62, %v405_v60  ;;  %v416_v38 = vmul.f32 %v1532_v20, %v380_v10  ;;  %v381_v40 = vsub.f32 %v1394_v63, %v1524_v59 }
  0x80   : > { %v900_v48 = vpack.c.bf16 %v411_v32, %v409_v30  ;;  %v413_v50 = vmul.f32 %v1554_v49, %v377_v12  ;;  %v415_v54 = vmul.f32 %v1554_v49, %v379_v17  ;;  %v418_v57 = vmul.f32 %v1532_v20, %v382_v24 }
  0x81   : > { %893 = vmatpush1.bf16.msra.mxu0 %v892_v11  ;;  %930 = vmatpush1.bf16.msra.mxu1 %v892_v11  ;;  %v902_v56 = vpack.c.bf16 %v416_v38, %v414_v34  ;;  %v420_v58 = vmul.f32 %v1532_v20, %v384_v25  ;;  %v385_v60 = vsub.f32 %v1424_v31, %v1524_v59 }
  0x82   : > { %895 = vmatprep.subr.bf16.mxu0 %v894_v5  ;;  %923 = vmatprep.subr.bf16.mxu1 %v894_v5  ;;  %v387_v62 = vsub.f32 %v1442_v45, %v1524_v59  ;;  %v390_v5 = vsub.f32 %v1408_v14, %v1517_v39  ;;  %v392_v6 = vsub.f32 %v1420_v28, %v1517_v39 }
  0x83   : > { %v904_v8 = vpack.c.bf16 %v415_v54, %v413_v50  ;;  %v417_v10 = vmul.f32 %v1554_v49, %v381_v40  ;;  %v419_v11 = vmul.f32 %v1554_v49, %v383_v43  ;;  %v906_v12 = vpack.c.bf16 %v420_v58, %v418_v57 }
  0x84   : > { %v422_v17 = vmul.f32 %v1532_v20, %v386_v46  ;;  %v424_v24 = vmul.f32 %v1532_v20, %v388_v47  ;;  %v389_v25 = vsub.f32 %v1454_v55, %v1524_v59  ;;  %v394_v30 = vsub.f32 %v1438_v41, %v1517_v39 }
  0x85   : > { %897 = vmatpush1.bf16.msra.mxu0 %v896_v26  ;;  %931 = vmatpush1.bf16.msra.mxu1 %v896_v26  ;;  %v391_v26 = vsub.f32 %v1469_v7, %v1524_v59  ;;  %v396_v32 = vsub.f32 %v1450_v52, %v1517_v39  ;;  %v421_v34 = vmul.f32 %v1554_v49, %v385_v60 }
  0x86   : > { %899 = vmatprep.subr.bf16.mxu0 %v898_v33  ;;  %924 = vmatprep.subr.bf16.mxu1 %v898_v33  ;;  %v908_v33 = vpack.c.bf16 %v419_v11, %v417_v10  ;;  %v423_v38 = vmul.f32 %v1554_v49, %v387_v62  ;;  %v910_v40 = vpack.c.bf16 %v424_v24, %v422_v17  ;;  %v442_v10 = vld [vmem:[%s1835_s1 + $0x48] sm:$0xff]  ;;  %v435_v11 = vld [vmem:[%s1835_s1 + $0x10] sm:$0xff]  ;;  %v436_v17 = vld [vmem:[%s1835_s1 + $0x18] sm:$0xff] }
  0x87   : > { %v426_v43 = vmul.f32 %v1532_v20, %v390_v5  ;;  %v428_v46 = vmul.f32 %v1532_v20, %v392_v6  ;;  %v393_v47 = vsub.f32 %v1478_v22, %v1524_v59  ;;  %v395_v39 = vsub.f32 %v1490_v36, %v1524_v59  ;;  %v444_v24 = vld [vmem:[%s1835_s1 + $0x58] sm:$0xff] }
  0x88   : > { %v425_v50 = vmul.f32 %v1554_v49, %v389_v25  ;;  %v427_v54 = vmul.f32 %v1554_v49, %v391_v26  ;;  %v430_v57 = vmul.f32 %v1532_v20, %v394_v30  ;;  %v432_v58 = vmul.f32 %v1532_v20, %v396_v32  ;;  %v433_v20 = vld [vmem:[%s1835_s1] sm:$0xff]  ;;  %v438_v30 = vld [vmem:[%s1835_s1 + $0x28] sm:$0xff] }
  0x89   : > { %901 = vmatpush1.bf16.msra.mxu0 %v900_v48  ;;  %932 = vmatpush1.bf16.msra.mxu1 %v900_v48  ;;  %v912_v48 = vpack.c.bf16 %v423_v38, %v421_v34  ;;  %v429_v62 = vmul.f32 %v1554_v49, %v393_v47  ;;  %v431_v59 = vmul.f32 %v1554_v49, %v395_v39  ;;  %v434_v49 = vld [vmem:[%s1835_s1 + $0x8] sm:$0xff]  ;;  %v437_v25 = vld [vmem:[%s1835_s1 + $0x20] sm:$0xff]  ;;  %v447_v34 = vld [vmem:[%s1835_s1 + $0x70] sm:$0xff] }
  0x8a   : > { %903 = vmatprep.subr.bf16.mxu0 %v902_v56  ;;  %925 = vmatprep.subr.bf16.mxu1 %v902_v56  ;;  %v914_v56 = vpack.c.bf16 %v428_v46, %v426_v43  ;;  %v916_v60 = vpack.c.bf16 %v427_v54, %v425_v50  ;;  %v918_v5 = vpack.c.bf16 %v432_v58, %v430_v57  ;;  %v445_v26 = vld [vmem:[%s1835_s1 + $0x60] sm:$0xff]  ;;  %v446_v32 = vld [vmem:[%s1835_s1 + $0x68] sm:$0xff]  ;;  %v440_v38 = vld [vmem:[%s1835_s1 + $0x38] sm:$0xff] }
  0x8b   : > { %v920_v6 = vpack.c.bf16 %v431_v59, %v429_v62 }
  0x8d   : > { %905 = vmatpush1.bf16.msra.mxu0 %v904_v8  ;;  %933 = vmatpush1.bf16.msra.mxu1 %v904_v8  ;;  %v441_v8 = vld [vmem:[%s1835_s1 + $0x40] sm:$0xff] }
  0x8e   : > { %907 = vmatprep.subr.bf16.mxu0 %v906_v12  ;;  %926 = vmatprep.subr.bf16.mxu1 %v906_v12  ;;  %v443_v12 = vld [vmem:[%s1835_s1 + $0x50] sm:$0xff] }
  0x91   : > { %909 = vmatpush1.bf16.msra.mxu0 %v908_v33  ;;  %934 = vmatpush1.bf16.msra.mxu1 %v908_v33  ;;  %v439_v33 = vld [vmem:[%s1835_s1 + $0x30] sm:$0xff] }
  0x92   : > { %911 = vmatprep.subr.bf16.mxu0 %v910_v40  ;;  %927 = vmatprep.subr.bf16.mxu1 %v910_v40  ;;  %v448_v40 = vld [vmem:[%s1835_s1 + $0x78] sm:$0xff] }
  0x95   : > { %913 = vmatpush1.bf16.msra.mxu0 %v912_v48  ;;  %935 = vmatpush1.bf16.msra.mxu1 %v912_v48 }
  0x96   : > { %915 = vmatprep.subr.bf16.mxu0 %v914_v56  ;;  %928 = vmatprep.subr.bf16.mxu1 %v914_v56 }
  0x99   : > { %917 = vmatpush1.bf16.msra.mxu0 %v916_v60  ;;  %936 = vmatpush1.bf16.msra.mxu1 %v916_v60 }
  0x9a   : > { %919 = vmatprep.subr.bf16.mxu0 %v918_v5  ;;  %929 = vmatprep.subr.bf16.mxu1 %v918_v5 }
  0x9d   : > { %921 = vmatpush1.bf16.msra.mxu0 %v920_v6  ;;  %937 = vmatpush1.bf16.msra.mxu1 %v920_v6 }
  0xa0   : > { %610 = vmatmul.mubr.f32.vlgmr.msra.gmra.mrb[0].mxu0 %v433_v20  ;;  %658 = vmatmul.mubr.f32.vlgmr.msra.gmra.mrb[0].mxu1 %v441_v8 }
  0xa1   : > { %615 = vmatprep.mubr.f32.mxu0 %v1129_v0  ;;  %663 = vmatprep.mubr.f32.mxu1 %v1129_v0 }
  0xa4   : > { %616 = vmatmul.mubr.f32.gmra.mrb[2].mxu0 %v434_v49  ;;  %664 = vmatmul.mubr.f32.gmra.mrb[2].mxu1 %v442_v10 }
  0xa5   : > { %621 = vmatprep.mubr.f32.mxu0 %v1129_v0  ;;  %669 = vmatprep.mubr.f32.mxu1 %v1129_v0 }
  0xa8   : > { %622 = vmatmul.mubr.f32.gmra.mrb[4].mxu0 %v435_v11  ;;  %670 = vmatmul.mubr.f32.gmra.mrb[4].mxu1 %v443_v12 }
  0xa9   : > { %627 = vmatprep.mubr.f32.mxu0 %v1129_v0  ;;  %675 = vmatprep.mubr.f32.mxu1 %v1129_v0 }
  0xac   : > { %628 = vmatmul.mubr.f32.gmra.mrb[6].mxu0 %v436_v17  ;;  %676 = vmatmul.mubr.f32.gmra.mrb[6].mxu1 %v444_v24 }
  0xad   : > { %633 = vmatprep.mubr.f32.mxu0 %v1129_v0  ;;  %681 = vmatprep.mubr.f32.mxu1 %v1129_v0 }
  0xb0   : > { %634 = vmatmul.mubr.f32.gmra.mrb[8].mxu0 %v437_v25  ;;  %682 = vmatmul.mubr.f32.gmra.mrb[8].mxu1 %v445_v26 }
  0xb1   : > { %639 = vmatprep.mubr.f32.mxu0 %v1129_v0  ;;  %687 = vmatprep.mubr.f32.mxu1 %v1129_v0 }
  0xb4   : > { %640 = vmatmul.mubr.f32.gmra.mrb[10].mxu0 %v438_v30  ;;  %688 = vmatmul.mubr.f32.gmra.mrb[10].mxu1 %v446_v32 }
  0xb5   : > { %645 = vmatprep.mubr.f32.mxu0 %v1129_v0  ;;  %693 = vmatprep.mubr.f32.mxu1 %v1129_v0 }
  0xb8   : > { %646 = vmatmul.mubr.f32.gmra.mrb[12].mxu0 %v439_v33  ;;  %694 = vmatmul.mubr.f32.gmra.mrb[12].mxu1 %v447_v34 }
  0xb9   : > { %651 = vmatprep.mubr.f32.mxu0 %v1129_v0  ;;  %699 = vmatprep.mubr.f32.mxu1 %v1129_v0 }
  0xbc   : > { %652 = vmatmul.mubr.f32.gmra.mrb[14].mxu0 %v440_v38  ;;  %700 = vmatmul.mubr.f32.gmra.mrb[14].mxu1 %v448_v40 }
  0xc0   : > { %v468_v43 = vpop.permute.xlu0 %467 }
  0xc1   : > { %v478_v46 = vpop.permute.xlu1 %477 }
  0xc4   : > { %v473_v47 = vpop.permute.xlu0 %472 }
  0xc5   : > { %v1690_v39 = vpop.permute.xlu1 %482 }
  0xc8   : > { %v1692_v48 = vpop.permute.xlu0 %487 }
  0xc9   : > { %v1694_v50 = vpop.permute.xlu1 %492 }
  0xcc   : > { %v1696_v0 = vpop.permute.xlu0 %497 }
  0xcd   : > { %v1698_v54 = vpop.permute.xlu1 %502 }
  0xd0   : > { %v508_v56 = vpop.permute.xlu0 %507 }
  0xd1   : > { %v513_v8 = vpop.permute.xlu1 %512 }
  0xd4   : > { %v518_v30 = vpop.permute.xlu0 %517 }
 0x173   : > { %v611_v57 = vpop.f32.mrb[0].mxu0  ;;  %v659_v58 = vpop.f32.mrb[0].mxu1 }
 0x174   : > { %v612_v60 = vadd.f32 %v611_v57, %v468_v43  ;;  %v660_v62 = vadd.f32 %v659_v58, %v508_v56  ;;  %v613_v59 = vpop.f32.mrb[1].mxu0  ;;  %v661_v5 = vpop.f32.mrb[1].mxu1 }
 0x175   : > { %v614_v6 = vadd.f32 %v613_v59, %v468_v43  ;;  %v662_v20 = vadd.f32 %v661_v5, %v508_v56 }
 0x176   : > { %v706_v49 = vadd.f32 %v612_v60, %v1311_v15  ;;  %v722_v10 = vadd.f32 %v660_v62, %v1394_v63  ;;  %v523_v60 = vpop.permute.xlu1 %522 }
 0x177   : > { %v707_v11 = vadd.f32 %v614_v6, %v1281_v1  ;;  %v723_v12 = vadd.f32 %v662_v20, %v1348_v35  ;;  %v617_v17 = vpop.f32.mrb[2].mxu0  ;;  %v665_v24 = vpop.f32.mrb[2].mxu1 }
 0x178   : > { %738 = vst [vmem:[%s1706_s22] sm:$0xff] %v706_v49  ;;  %754 = vst [vmem:[%s1706_s22 + $0x80] sm:$0xff] %v722_v10  ;;  %v618_v25 = vadd.f32 %v617_v17, %v473_v47  ;;  %v666_v15 = vadd.f32 %v665_v24, %v513_v8  ;;  %v619_v63 = vpop.f32.mrb[3].mxu0  ;;  %v667_v26 = vpop.f32.mrb[3].mxu1 }
 0x179   : > { %739 = vst [vmem:[%s1706_s22 + $0x8] sm:$0xff] %v707_v11  ;;  %755 = vst [vmem:[%s1706_s22 + $0x88] sm:$0xff] %v723_v12  ;;  %v620_v1 = vadd.f32 %v619_v63, %v473_v47  ;;  %v668_v35 = vadd.f32 %v667_v26, %v513_v8 }
 0x17a   : > { %v708_v32 = vadd.f32 %v618_v25, %v1314_v16  ;;  %v724_v33 = vadd.f32 %v666_v15, %v1412_v18 }
 0x17b   : > { %v709_v34 = vadd.f32 %v620_v1, %v1284_v2  ;;  %v725_v38 = vadd.f32 %v668_v35, %v1360_v42  ;;  %v623_v40 = vpop.f32.mrb[4].mxu0  ;;  %v671_v43 = vpop.f32.mrb[4].mxu1 }
 0x17c   : > { %740 = vst [vmem:[%s1706_s22 + $0x10] sm:$0xff] %v708_v32  ;;  %756 = vst [vmem:[%s1706_s22 + $0x90] sm:$0xff] %v724_v33  ;;  %v624_v56 = vadd.f32 %v623_v40, %v478_v46  ;;  %v672_v57 = vadd.f32 %v671_v43, %v518_v30  ;;  %v625_v47 = vpop.f32.mrb[5].mxu0  ;;  %v673_v58 = vpop.f32.mrb[5].mxu1 }
 0x17d   : > { %741 = vst [vmem:[%s1706_s22 + $0x18] sm:$0xff] %v709_v34  ;;  %757 = vst [vmem:[%s1706_s22 + $0x98] sm:$0xff] %v725_v38  ;;  %v626_v16 = vadd.f32 %v625_v47, %v478_v46  ;;  %v674_v18 = vadd.f32 %v673_v58, %v518_v30 }
 0x17e   : > { %v710_v2 = vadd.f32 %v624_v56, %v1319_v19  ;;  %v726_v42 = vadd.f32 %v672_v57, %v1424_v31  ;;  %v528_v31 = vpop.permute.xlu0 %527 }
 0x17f   : > { %v711_v62 = vadd.f32 %v626_v16, %v1287_v3  ;;  %v727_v59 = vadd.f32 %v674_v18, %v1372_v51  ;;  %v629_v5 = vpop.f32.mrb[6].mxu0  ;;  %v677_v6 = vpop.f32.mrb[6].mxu1 }
 0x180   : > { %742 = vst [vmem:[%s1706_s22 + $0x20] sm:$0xff] %v710_v2  ;;  %758 = vst [vmem:[%s1706_s22 + $0xa0] sm:$0xff] %v726_v42  ;;  %v630_v20 = vadd.f32 %v629_v5, %v1690_v39  ;;  %v678_v46 = vadd.f32 %v677_v6, %v523_v60  ;;  %v631_v8 = vpop.f32.mrb[7].mxu0  ;;  %v679_v49 = vpop.f32.mrb[7].mxu1 }
 0x181   : > { %743 = vst [vmem:[%s1706_s22 + $0x28] sm:$0xff] %v711_v62  ;;  %759 = vst [vmem:[%s1706_s22 + $0xa8] sm:$0xff] %v727_v59  ;;  %v632_v19 = vadd.f32 %v631_v8, %v1690_v39  ;;  %v680_v3 = vadd.f32 %v679_v49, %v523_v60 }
 0x182   : > { %v712_v51 = vadd.f32 %v630_v20, %v1328_v23  ;;  %v728_v10 = vadd.f32 %v678_v46, %v1442_v45  ;;  %v533_v45 = vpop.permute.xlu1 %532 }
 0x183   : > { %v713_v11 = vadd.f32 %v632_v19, %v1290_v4  ;;  %v729_v12 = vadd.f32 %v680_v3, %v1390_v61  ;;  %v635_v17 = vpop.f32.mrb[8].mxu0  ;;  %v683_v24 = vpop.f32.mrb[8].mxu1 }
 0x184   : > { %744 = vst [vmem:[%s1706_s22 + $0x30] sm:$0xff] %v712_v51  ;;  %760 = vst [vmem:[%s1706_s22 + $0xb0] sm:$0xff] %v728_v10  ;;  %v636_v25 = vadd.f32 %v635_v17, %v1692_v48  ;;  %v684_v39 = vadd.f32 %v683_v24, %v528_v31  ;;  %v637_v15 = vpop.f32.mrb[9].mxu0  ;;  %v685_v63 = vpop.f32.mrb[9].mxu1 }
 0x185   : > { %745 = vst [vmem:[%s1706_s22 + $0x38] sm:$0xff] %v713_v11  ;;  %761 = vst [vmem:[%s1706_s22 + $0xb8] sm:$0xff] %v729_v12  ;;  %v638_v23 = vadd.f32 %v637_v15, %v1692_v48  ;;  %v686_v4 = vadd.f32 %v685_v63, %v528_v31 }
 0x186   : > { %v714_v61 = vadd.f32 %v636_v25, %v1338_v29  ;;  %v730_v26 = vadd.f32 %v684_v39, %v1454_v55  ;;  %v538_v55 = vpop.permute.xlu0 %537 }
 0x187   : > { %v715_v1 = vadd.f32 %v638_v23, %v1301_v9  ;;  %v731_v35 = vadd.f32 %v686_v4, %v1408_v14  ;;  %v641_v30 = vpop.f32.mrb[10].mxu0  ;;  %v689_v32 = vpop.f32.mrb[10].mxu1 }
 0x188   : > { %746 = vst [vmem:[%s1706_s22 + $0x40] sm:$0xff] %v714_v61  ;;  %762 = vst [vmem:[%s1706_s22 + $0xc0] sm:$0xff] %v730_v26  ;;  %v642_v33 = vadd.f32 %v641_v30, %v1694_v50  ;;  %v690_v48 = vadd.f32 %v689_v32, %v533_v45  ;;  %v643_v34 = vpop.f32.mrb[11].mxu0  ;;  %v691_v38 = vpop.f32.mrb[11].mxu1 }
 0x189   : > { %747 = vst [vmem:[%s1706_s22 + $0x48] sm:$0xff] %v715_v1  ;;  %763 = vst [vmem:[%s1706_s22 + $0xc8] sm:$0xff] %v731_v35  ;;  %v644_v29 = vadd.f32 %v643_v34, %v1694_v50  ;;  %v692_v9 = vadd.f32 %v691_v38, %v533_v45 }
 0x18a   : > { %v716_v14 = vadd.f32 %v642_v33, %v1352_v37  ;;  %v732_v40 = vadd.f32 %v690_v48, %v1469_v7 }
 0x18b   : > { %v717_v43 = vadd.f32 %v644_v29, %v1307_v13  ;;  %v733_v56 = vadd.f32 %v692_v9, %v1420_v28  ;;  %v647_v57 = vpop.f32.mrb[12].mxu0  ;;  %v695_v47 = vpop.f32.mrb[12].mxu1 }
 0x18c   : > { %748 = vst [vmem:[%s1706_s22 + $0x50] sm:$0xff] %v716_v14  ;;  %764 = vst [vmem:[%s1706_s22 + $0xd0] sm:$0xff] %v732_v40  ;;  %v648_v58 = vadd.f32 %v647_v57, %v1696_v0  ;;  %v696_v50 = vadd.f32 %v695_v47, %v538_v55  ;;  %v649_v16 = vpop.f32.mrb[13].mxu0  ;;  %v697_v18 = vpop.f32.mrb[13].mxu1 }
 0x18d   : > { %749 = vst [vmem:[%s1706_s22 + $0x58] sm:$0xff] %v717_v43  ;;  %765 = vst [vmem:[%s1706_s22 + $0xd8] sm:$0xff] %v733_v56  ;;  %v650_v37 = vadd.f32 %v649_v16, %v1696_v0  ;;  %v698_v13 = vadd.f32 %v697_v18, %v538_v55  ;;  %v543_v28 = vpop.permute.xlu1 %542 }
 0x18e   : > { %v718_v7 = vadd.f32 %v648_v58, %v1364_v44  ;;  %v734_v60 = vadd.f32 %v696_v50, %v1478_v22 }
 0x18f   : > { %v719_v2 = vadd.f32 %v650_v37, %v1324_v21  ;;  %v735_v42 = vadd.f32 %v698_v13, %v1438_v41  ;;  %v653_v62 = vpop.f32.mrb[14].mxu0  ;;  %v701_v59 = vpop.f32.mrb[14].mxu1 }
 0x190   : > { %750 = vst [vmem:[%s1706_s22 + $0x60] sm:$0xff] %v718_v7  ;;  %766 = vst [vmem:[%s1706_s22 + $0xe0] sm:$0xff] %v734_v60  ;;  %v654_v0 = vadd.f32 %v653_v62, %v1698_v54  ;;  %v702_v5 = vadd.f32 %v701_v59, %v543_v28  ;;  %v655_v44 = vpop.f32.mrb[15].mxu0  ;;  %v703_v22 = vpop.f32.mrb[15].mxu1 }
 0x191   : > { %751 = vst [vmem:[%s1706_s22 + $0x68] sm:$0xff] %v719_v2  ;;  %767 = vst [vmem:[%s1706_s22 + $0xe8] sm:$0xff] %v735_v42  ;;  %v656_v21 = vadd.f32 %v655_v44, %v1698_v54  ;;  %v704_v41 = vadd.f32 %v703_v22, %v543_v28 }
 0x192   : > { %v720_v6 = vadd.f32 %v654_v0, %v1376_v53  ;;  %v736_v20 = vadd.f32 %v702_v5, %v1490_v36 }
 0x193   : > { %v721_v46 = vadd.f32 %v656_v21, %v1334_v27  ;;  %v737_v8 = vadd.f32 %v704_v41, %v1450_v52 }
 0x194   : > { %752 = vst [vmem:[%s1706_s22 + $0x70] sm:$0xff] %v720_v6  ;;  %768 = vst [vmem:[%s1706_s22 + $0xf0] sm:$0xff] %v736_v20 }
 0x195   : > { %753 = vst [vmem:[%s1706_s22 + $0x78] sm:$0xff] %v721_v46  ;;  %769 = vst [vmem:[%s1706_s22 + $0xf8] sm:$0xff] %v737_v8 }
 0x196   : > { %1055 = shalt.err (!%p1052_p5)
}
 0x197   : > { %s1056_s19 = scalar_lea.hbm %s1777_s28, 4096  ;;  %s1060_s8 = scalar_lea.hbm %s1837_s3, 8192 }
 0x198   : > { %p1057_p4 = scmp.ne.s32.totalorder %s1777_s28, %s1056_s19  ;;  %p1061_p12 = scmp.lt.u32.totalorder %s1777_s28, %s1837_s3 }
 0x199   : > { %p1062_p1 = scmp.lt.u32.totalorder %s1060_s8, %s1056_s19  ;;  %p1064_p8 = scmp.lt.u32.totalorder %s1056_s19, %s1777_s28 }
 0x19a   : > { %p1058_p7 = pnand %p1057_p4, %p1845_p9 }
 0x19b   : > { %p1063_p3 = por %p1062_p1, %p1061_p12 }
 0x19c   : > { %p1059_p10 = pneg %p1058_p7 }
 0x19d   : > { %p1065_p11 = por %p1064_p8, %p1063_p3 }
 0x19f   : > { %p1066_p0 = pnand %p1065_p11, %p1059_p10 }
 0x1a1   : > { %1069 = shalt.err (!%p1066_p0)
}
 0x1a2   : > { %s1132_s22 = smov 256   ;;  %s1133_s18 = smov 16  }
 0x1a3   : > { %940 = dma.vmem_to_hbm [thread:$0]  (%p1845_p9), %s1779_s23, 4096, %s1777_s28, %s771_s29, %s1132_s22, %s1132_s22, %s1133_s18  }
 0x1a4 PF: > { %s801_s15 = sand.u32 1, %s1104_s12   ;;  %p1846_p6 = scmp.ne.s32.totalorder %s1842_s27, 0 }
 0x1a5   : > { %p1847_p13 = scmp.ge.s32.totalorder %s1124_s17, 2  ;;  %s802_s21 = scalar_lea.sflag [#allocation4], %s801_s15 }
 0x1a7   : > { %p947_p2 = pnand %p1847_p13, %p1846_p6 }
 0x1a9   : > { %1099 = dma.done.wait (!%p947_p2), %s802_s21, 4096  }
 0x1aa   : > { %1101 = vsyncadd (!%p947_p2), %s802_s21, 4294963200  ;;  %s19_s17 = sadd.s32 1, %s1124_s17   ;;  %s1848_s12 = smov %s1108_s13 }
 0x1ab   : > { %p16_p5 = scmp.ge.s32.totalorder %s19_s17, 4   ;;  %s1849_s13 = smov %s1112_s14 }
 0x1ac   : > { %s1850_s14 = smov %s1210_s26  ;;  %s1851_s15 = smov %s1120_s16 }
 0x1ad   : > { %s1852_s16 = smov %s1854_s20  ;;  %18 = sbr.rel (!%p16_p5) target bundleno = 6 (0x6), region = 77 }
 0x1b4   :  { %807 = vsyncpa [#allocation3], 1 }
 0x1b5   :  { %809 = vsyncpa [#allocation3 + $0x1], 1 }
 0x1b6   :  { %810 = vsyncpa [#allocation4], 1 }
 0x1b7   :  { %812 = vsyncpa [#allocation4 + $0x1], 1 }

</bundles_post_ra>
